<compile_context>
chip_gen: v5e
topology: v5e:2x2
jax: 0.10.0
libtpu: 0.0.40
codegen_flags: <defaults>
</compile_context>

<pallas_src>
import functools

import jax
import jax.numpy as jnp
from jax import lax
from jax.experimental import pallas as pl
from jax.experimental.pallas import tpu as pltpu


def _round_up(a, m):
    return ((a + m - 1) // m) * m


def proxynca_kernel(norm_s_ref, labels_ref, x_ref, pT_ref, loss_ref,
                    *, num_rows, num_proxies):
    # norm_s_ref : SMEM (1,)          f32   learned scale
    # labels_ref : VMEM (bb, 1)       i32   labels for this batch block
    # x_ref      : VMEM (bb, D)       f32   input rows for this batch block
    # pT_ref     : VMEM (D, P_pad)    f32/bf16  proxies^T (lane-dense, resident)
    # loss_ref   : VMEM (1, 1)        f32   running sum of loss / num_rows
    pid = pl.program_id(0)
    bb = x_ref.shape[0]

    @pl.when(pid == 0)
    def _init():
        loss_ref[...] = jnp.zeros_like(loss_ref)

    x = x_ref[...].astype(jnp.float32)                       # [bb, D]
    s = norm_s_ref[0]                                        # scalar f32

    # feats = norm_s * x / ||x||  fused as a single per-row scale.
    # (No eps: zero-norm rows give NaN, matching torch.norm-divide behavior.)
    sq = jnp.sum(x * x, axis=1, keepdims=True)               # [bb, 1]  VPU
    inv = s * lax.rsqrt(sq)                                  # [bb, 1]  EUP
    feats = x * inv                                          # [bb, D]

    # sims = feats @ proxies^T with a lane-dense (D, P_pad) RHS -> MXU.
    sims = jnp.dot(feats.astype(pT_ref.dtype), pT_ref[...],
                   preferred_element_type=jnp.float32)       # [bb, P_pad] f32

    col = lax.broadcasted_iota(jnp.int32, sims.shape, 1)     # [bb, P_pad]
    # Mask padded proxy columns out of the softmax.
    sims_m = jnp.where(col < num_proxies, sims, jnp.float32(-1e30))

    # Cross-entropy pieces, all kept 2-D ([bb,1]) -- no sublane->lane squeeze.
    m = jnp.max(sims_m, axis=1, keepdims=True)                            # [bb,1]
    lse = m + jnp.log(jnp.sum(jnp.exp(sims_m - m), axis=1, keepdims=True))  # [bb,1]

    labels = labels_ref[...]                                              # [bb,1]
    picked = jnp.sum(jnp.where(col == labels, sims, 0.0),
                     axis=1, keepdims=True)                               # [bb,1]

    # Mask rows beyond the true batch size (batch padding rows).
    row = lax.broadcasted_iota(jnp.int32, (bb, 1), 0) + pid * bb
    contrib = jnp.where(row < num_rows, lse - picked, 0.0)                # [bb,1]

    loss_ref[...] += jnp.sum(contrib, keepdims=True) * (1.0 / num_rows)   # (1,1)


def proxy_nca_loss(x, labels, proxies, norm_s, *, matmul_dtype=jnp.float32):
    """x: [B, D] f32, labels: [B] int, proxies: [P, D] f32, norm_s: scalar f32."""
    B, D = x.shape
    P, Dp = proxies.shape
    assert D == Dp

    # Batch tiling: block of rows (multiple of 8 sublanes, capped at 128).
    block_b = min(128, _round_up(B, 8))
    B_pad = _round_up(B, block_b)
    nb = B_pad // block_b
    # Lane padding for the proxy axis.
    P_pad = _round_up(P, 128)

    x32 = x.astype(jnp.float32)
    labels_col = labels.astype(jnp.int32).reshape(B, 1)
    if B_pad != B:
        # Pad rows with ones (finite norm); their loss contribution is masked.
        x32 = jnp.concatenate(
            [x32, jnp.ones((B_pad - B, D), jnp.float32)], axis=0)
        labels_col = jnp.concatenate(
            [labels_col, jnp.zeros((B_pad - B, 1), jnp.int32)], axis=0)

    # One-time wrapper-side layout plumbing: lane-dense RHS [D, P_pad].
    proxies_t = jnp.transpose(proxies.astype(jnp.float32))        # [D, P]
    if P_pad != P:
        proxies_t = jnp.concatenate(
            [proxies_t, jnp.zeros((D, P_pad - P), jnp.float32)], axis=1)
    proxies_t = proxies_t.astype(matmul_dtype)

    norm_s_arr = jnp.asarray(norm_s, jnp.float32).reshape(1)

    kernel = functools.partial(proxynca_kernel, num_rows=B, num_proxies=P)

    out = pl.pallas_call(
        kernel,
        out_shape=jax.ShapeDtypeStruct((1, 1), jnp.float32),
        grid=(nb,),
        in_specs=[
            pl.BlockSpec(memory_space=pltpu.MemorySpace.SMEM),        # norm_s
            pl.BlockSpec((block_b, 1), lambda i: (i, 0)),             # labels
            pl.BlockSpec((block_b, D), lambda i: (i, 0)),             # x rows
            pl.BlockSpec((D, P_pad), lambda i: (0, 0)),               # proxies^T (resident)
        ],
        out_specs=pl.BlockSpec((1, 1), lambda i: (0, 0)),             # scalar acc
        compiler_params=pltpu.CompilerParams(
            dimension_semantics=("arbitrary",)),                      # accumulated axis
    )(norm_s_arr, labels_col, x32, proxies_t)
    return out[0, 0]


def proxy_nca_loss_ref(x, labels, proxies, norm_s):
    """Pure-JAX reference mirroring the PyTorch forward."""
    feats = norm_s * x / jnp.linalg.norm(x, axis=1, keepdims=True)
    sims = feats @ proxies.T
    logp = jax.nn.log_softmax(sims, axis=-1)
    return -jnp.mean(logp[jnp.arange(x.shape[0]), labels])


if __name__ == "__main__":
    # Module defaults: num_proxies=110, feature_size=128, normalize_scale=3.0
    num_proxies, feature_size, batch = 110, 128, 8

    key = jax.random.PRNGKey(0)
    k_proxies, k_x, k_labels = jax.random.split(key, 3)

    # Deterministic synthetic "parameters" (matching __init__ shapes):
    proxies = jax.random.normal(k_proxies, (num_proxies, feature_size),
                                dtype=jnp.float32) / 8.0
    norm_s = jnp.float32(3.0)   # learn_scale=True -> a (1,) parameter; value 3.0

    # Example inputs
    x = jax.random.normal(k_x, (batch, feature_size), dtype=jnp.float32)
    labels = jax.random.randint(k_labels, (batch,), 0, num_proxies,
                                dtype=jnp.int32)

    loss = proxy_nca_loss(x, labels, proxies, norm_s)
    loss = jax.block_until_ready(loss)

    ref = proxy_nca_loss_ref(x, labels, proxies, norm_s)
    assert jnp.allclose(loss, ref, rtol=1e-5, atol=1e-5), (loss, ref)

    print("KERNEL_OK")
</pallas_src>

<mosaic_0001>
module attributes {stable_mosaic.version = 11 : i64} {
  func.func @proxynca_kernel(%arg0: i32, %arg1: memref<1xf32, #tpu.memory_space<smem>>, %arg2: memref<8x1xi32, #tpu.memory_space<vmem>>, %arg3: memref<8x128xf32, #tpu.memory_space<vmem>>, %arg4: memref<128x128xf32, #tpu.memory_space<vmem>>, %arg5: memref<1x1xf32, #tpu.memory_space<vmem>>) attributes {dimension_semantics = [#tpu.dimension_semantics<arbitrary>], iteration_bounds = array<i64: 1>, scalar_prefetch = 0 : i64, scratch_operands = 0 : i64, tpu.core_type = #tpu.core_type<tc>, window_params = [{transform_indices = @transform_0, window_bounds = array<i64: 1>}, {transform_indices = @transform_1, window_bounds = array<i64: 8, 1>}, {transform_indices = @transform_2, window_bounds = array<i64: 8, 128>}, {pipeline_mode = #tpu.pipeline_mode<synchronous>, transform_indices = @transform_3, window_bounds = array<i64: 128, 128>}, {pipeline_mode = #tpu.pipeline_mode<synchronous>, transform_indices = @transform_4, window_bounds = array<i64: 1, 1>}]} {
    %c0_i32 = arith.constant 0 : i32
    %0 = arith.cmpi eq, %arg0, %c0_i32 : i32
    %1 = arith.extui %0 : i1 to i32
    %c0_i32_0 = arith.constant 0 : i32
    %2 = arith.cmpi ne, %1, %c0_i32_0 : i32
    scf.if %2 {
      %cst_21 = arith.constant 0.000000e+00 : f32
      %55 = vector.broadcast %cst_21 : f32 to vector<1x1xf32>
      %c0_22 = arith.constant 0 : index
      %c0_23 = arith.constant 0 : index
      %56 = vector.load %arg5[%c0_22, %c0_23] : memref<1x1xf32, #tpu.memory_space<vmem>>, vector<1x1xf32>
      tpu.vector_store %arg5[%c0_22, %c0_23], %55 {strides = array<i32>} : memref<1x1xf32, #tpu.memory_space<vmem>>, vector<1x1xf32>,
    } else {
    }
    %c0 = arith.constant 0 : index
    %c0_1 = arith.constant 0 : index
    %3 = vector.load %arg3[%c0, %c0_1] : memref<8x128xf32, #tpu.memory_space<vmem>>, vector<8x128xf32>
    %c0_2 = arith.constant 0 : index
    %4 = memref.load %arg1[%c0_2] : memref<1xf32, #tpu.memory_space<smem>>
    %5 = arith.mulf %3, %3 : vector<8x128xf32>
    %cst = arith.constant dense<0.000000e+00> : vector<8xf32>
    %6 = vector.multi_reduction <add>, %5, %cst [1] : vector<8x128xf32> to vector<8xf32>
    %7 = vector.shape_cast %6 : vector<8xf32> to vector<8x1xf32>
    %8 = math.rsqrt %7 : vector<8x1xf32>
    %9 = vector.broadcast %4 : f32 to vector<8x1xf32>
    %10 = arith.mulf %9, %8 : vector<8x1xf32>
    %11 = vector.broadcast %10 : vector<8x1xf32> to vector<8x128xf32>
    %12 = arith.mulf %3, %11 : vector<8x128xf32>
    %c0_3 = arith.constant 0 : index
    %c0_4 = arith.constant 0 : index
    %13 = vector.load %arg4[%c0_3, %c0_4] : memref<128x128xf32, #tpu.memory_space<vmem>>, vector<128x128xf32>
    %cst_5 = arith.constant dense<0.000000e+00> : vector<8x128xf32>
    %14 = tpu.matmul %12, %13, %cst_5 {dimension_numbers = #tpu.dot_dimension_numbers<[1], [0], [0], [1], [0, 0, 1, 1], [], []>} : vector<8x128xf32>, vector<128x128xf32>, vector<8x128xf32> -> vector<8x128xf32>
    %15 = tpu.iota {dimensions = array<i32: 1>} : vector<8x128xi32>
    %c110_i32 = arith.constant 110 : i32
    %16 = vector.broadcast %c110_i32 : i32 to vector<8x128xi32>
    %17 = arith.cmpi slt, %15, %16 : vector<8x128xi32>
    %cst_6 = arith.constant -1.000000e+30 : f32
    %18 = vector.broadcast %cst_6 : f32 to vector<8x128xf32>
    %19 = arith.select %17, %14, %18 : vector<8x128xi1>, vector<8x128xf32>
    %cst_7 = arith.constant dense<0xFF800000> : vector<8xf32>
    %20 = vector.multi_reduction <maximumf>, %19, %cst_7 [1] : vector<8x128xf32> to vector<8xf32>
    %21 = vector.shape_cast %20 : vector<8xf32> to vector<8x1xf32>
    %22 = vector.broadcast %21 : vector<8x1xf32> to vector<8x128xf32>
    %23 = arith.subf %19, %22 : vector<8x128xf32>
    %24 = math.exp %23 : vector<8x128xf32>
    %cst_8 = arith.constant dense<0.000000e+00> : vector<8xf32>
    %25 = vector.multi_reduction <add>, %24, %cst_8 [1] : vector<8x128xf32> to vector<8xf32>
    %26 = vector.shape_cast %25 : vector<8xf32> to vector<8x1xf32>
    %27 = math.log %26 : vector<8x1xf32>
    %28 = arith.addf %21, %27 : vector<8x1xf32>
    %c0_9 = arith.constant 0 : index
    %c0_10 = arith.constant 0 : index
    %29 = vector.load %arg2[%c0_9, %c0_10] : memref<8x1xi32, #tpu.memory_space<vmem>>, vector<8x1xi32>
    %30 = vector.broadcast %29 : vector<8x1xi32> to vector<8x128xi32>
    %31 = arith.cmpi eq, %15, %30 : vector<8x128xi32>
    %cst_11 = arith.constant 0.000000e+00 : f32
    %32 = vector.broadcast %cst_11 : f32 to vector<8x128xf32>
    %33 = arith.select %31, %14, %32 : vector<8x128xi1>, vector<8x128xf32>
    %cst_12 = arith.constant dense<0.000000e+00> : vector<8xf32>
    %34 = vector.multi_reduction <add>, %33, %cst_12 [1] : vector<8x128xf32> to vector<8xf32>
    %35 = vector.shape_cast %34 : vector<8xf32> to vector<8x1xf32>
    %36 = tpu.iota {dimensions = array<i32: 0>} : vector<8x1xi32>
    %c8_i32 = arith.constant 8 : i32
    %37 = arith.muli %arg0, %c8_i32 : i32
    %38 = vector.broadcast %37 : i32 to vector<8x1xi32>
    %39 = arith.addi %36, %38 : vector<8x1xi32>
    %c8_i32_13 = arith.constant 8 : i32
    %40 = vector.broadcast %c8_i32_13 : i32 to vector<8x1xi32>
    %41 = arith.cmpi slt, %39, %40 : vector<8x1xi32>
    %42 = arith.subf %28, %35 : vector<8x1xf32>
    %cst_14 = arith.constant 0.000000e+00 : f32
    %43 = vector.broadcast %cst_14 : f32 to vector<8x1xf32>
    %44 = arith.select %41, %42, %43 : vector<8x1xi1>, vector<8x1xf32>
    %c0_15 = arith.constant 0 : index
    %c0_16 = arith.constant 0 : index
    %45 = vector.load %arg5[%c0_15, %c0_16] : memref<1x1xf32, #tpu.memory_space<vmem>>, vector<1x1xf32>
    %46 = vector.shape_cast %44 : vector<8x1xf32> to vector<1x8x1xf32>
    %cst_17 = arith.constant dense<0.000000e+00> : vector<1xf32>
    %47 = vector.multi_reduction <add>, %46, %cst_17 [1, 2] : vector<1x8x1xf32> to vector<1xf32>
    %48 = vector.shape_cast %47 : vector<1xf32> to vector<1x1x1xf32>
    %49 = vector.extract %48[0, 0, 0] : f32 from vector<1x1x1xf32>
    %50 = vector.broadcast %49 : f32 to vector<1x1xf32>
    %cst_18 = arith.constant 1.250000e-01 : f32
    %51 = vector.broadcast %cst_18 : f32 to vector<1x1xf32>
    %52 = arith.mulf %50, %51 : vector<1x1xf32>
    %53 = arith.addf %45, %52 : vector<1x1xf32>
    %c0_19 = arith.constant 0 : index
    %c0_20 = arith.constant 0 : index
    %54 = vector.load %arg5[%c0_19, %c0_20] : memref<1x1xf32, #tpu.memory_space<vmem>>, vector<1x1xf32>
    tpu.vector_store %arg5[%c0_19, %c0_20], %53 {strides = array<i32>} : memref<1x1xf32, #tpu.memory_space<vmem>>, vector<1x1xf32>,
    return
  }
  func.func @transform_0(%arg0: i32) -> i32 {
    %c0_i32 = arith.constant 0 : i32
    %c0_i32_0 = arith.constant 0 : i32
    return %c0_i32 : i32
  }
  func.func @transform_1(%arg0: i32) -> (i32, i32) {
    %c0_i32 = arith.constant 0 : i32
    %c0_i32_0 = arith.constant 0 : i32
    return %arg0, %c0_i32 : i32, i32
  }
  func.func @transform_2(%arg0: i32) -> (i32, i32) {
    %c0_i32 = arith.constant 0 : i32
    %c0_i32_0 = arith.constant 0 : i32
    return %arg0, %c0_i32 : i32, i32
  }
  func.func @transform_3(%arg0: i32) -> (i32, i32) {
    %c0_i32 = arith.constant 0 : i32
    %c0_i32_0 = arith.constant 0 : i32
    %c0_i32_1 = arith.constant 0 : i32
    return %c0_i32, %c0_i32_0 : i32, i32
  }
  func.func @transform_4(%arg0: i32) -> (i32, i32) {
    %c0_i32 = arith.constant 0 : i32
    %c0_i32_0 = arith.constant 0 : i32
    %c0_i32_1 = arith.constant 0 : i32
    return %c0_i32, %c0_i32_0 : i32, i32
  }
}

</mosaic_0001>

<bundles_post_ra>
// kernel: tpu_custom_call.1
= control target key start
LH: loop header
LB: loop body
LE: loop exit
PB: predicated region body
PF: predicated region fallthrough
CT: control target
= control target key end

     0   :  { %10 = vsyncpa [#allocation4], 0  ;;  %s275_s0 = inlined_call_operand.<no memory space> [shape: f32[1], index: 0, kind: input, shape index: {}]   ;;  %s276_s1 = inlined_call_operand.vmem [shape: s32[8,1], index: 1, kind: input, shape index: {}]   ;;  %s277_s2 = inlined_call_operand.vmem [shape: f32[8,128], index: 2, kind: input, shape index: {}]   ;;  %s278_s3 = inlined_call_operand.hbm [shape: f32[128,128], index: 3, kind: input, shape index: {}]   ;;  %s279_s4 = inlined_call_operand.hbm [shape: f32[1,1], index: 4, kind: output, shape index: {}]  }
   0x1   :  { %11 = vsyncpa [#allocation5], 0  ;;  %s22_s17 = sshll.u32 %s278_s3, 4  ;;  %s227_s18 = smov [#allocation3]   ;;  %s23_s17 = int_to_ptr.hbm [resolvable:$true] %s22_s17 }
   0x2   :  { %s24_s19 = sshll.u32 %s227_s18, 4  ;;  %s228_s20 = smov 128   ;;  %s25_s19 = int_to_ptr.vmem [resolvable:$true] %s24_s19 }
   0x3   :  { %s229_s21 = smov 8  }
   0x4   :  { %30 = dma.hbm_to_vmem [thread:$0]  %s23_s17, 2048, %s25_s19, [#allocation4], %s228_s20, %s228_s20, %s229_s21  }
   0x5   :  { %223 = dma.done.wait [#allocation4], 2048  }
   0x6   :  { %224 = vsyncadd [#allocation4], 4294965248  ;;  %v41_v0 = vld [vmem:[%s277_s2] sm:$0xff]  ;;  %v74_v1 = vld [vmem:[#allocation3 + $0x78] sm:$0xff]  ;;  %v230_v19 = vmov 0   ;;  %v56_v27 = vstv %s275_s0  ;;  %v95_v31 = vlaneseq  ;;  %vm126_vm5 = vcmask 7168  }
   0x7   :  { %v73_v2 = vld [vmem:[#allocation3 + $0x70] sm:$0xff]  ;;  %v43_v3 = vmul.f32 %v41_v0, %v41_v0  ;;  %75 = vmatpush.msra.mxu0 %v74_v1  ;;  %v72_v4 = vld [vmem:[#allocation3 + $0x68] sm:$0xff]  ;;  %v71_v5 = vld [vmem:[#allocation3 + $0x60] sm:$0xff]  ;;  %167 = vset.pattern.permute.xlu1 %v230_v19  ;;  %vm39_vm6 = vcmask 0   ;;  %v231_v48 = vmov 0.0   ;;  %s149_s29 = sshll.u32 %s279_s4, 4  ;;  %s150_s29 = int_to_ptr.hbm [resolvable:$true] %s149_s29 }
   0x8   :  { %v70_v6 = vld [vmem:[#allocation3 + $0x58] sm:$0xff]  ;;  %v69_v7 = vld [vmem:[#allocation3 + $0x50] sm:$0xff]  ;;  %v68_v8 = vld [vmem:[#allocation3 + $0x48] sm:$0xff]  ;;  %168 = vset.pattern.permute.xlu0 %v230_v19  ;;  %v96_v32 = vand.u32 127, %v95_v31  ;;  %40 = vst.msk [vmem:[#allocation6] sm:$0x1] %vm39_vm6, %v231_v48 }
   0x9   :  { %44 = vadd.xlane.f32.xlu0 %v43_v3  ;;  %76 = vmatpush.msra.mxu0 %v73_v2  ;;  %v67_v9 = vld [vmem:[#allocation3 + $0x40] sm:$0xff]  ;;  %v66_v10 = vld [vmem:[#allocation3 + $0x38] sm:$0xff]  ;;  %v65_v11 = vld [vmem:[#allocation3 + $0x30] sm:$0xff] }
   0xa   :  { %v64_v12 = vld [vmem:[#allocation3 + $0x28] sm:$0xff]  ;;  %v63_v13 = vld [vmem:[#allocation3 + $0x20] sm:$0xff]  ;;  %v62_v14 = vld [vmem:[#allocation3 + $0x18] sm:$0xff]  ;;  %vm97_vm4 = vcmp.lt.s32.totalorder %v96_v32, 110 }
   0xb   :  { %77 = vmatpush.msra.mxu0 %v72_v4  ;;  %v61_v15 = vld [vmem:[#allocation3 + $0x10] sm:$0xff]  ;;  %v60_v16 = vld [vmem:[#allocation3 + $0x8] sm:$0xff]  ;;  %v59_v17 = vld [vmem:[#allocation3] sm:$0xff] }
   0xc   :  { %v109_v18 = vld [vmem:[%s276_s1] sm:$0xff]  ;;  %s232_s1 = smov [#allocation6]  }
   0xd   :  { %78 = vmatpush.msra.mxu0 %v71_v5  ;;  %111 = vperm.xlu1 %167, %v109_v18   ;;  %s147_s26 = sshll.u32 %s232_s1, 4  ;;  %s148_s26 = int_to_ptr.vmem [resolvable:$true] %s147_s26 }
   0xf   :  { %79 = vmatpush.msra.mxu0 %v70_v6  ;;  %v125_v56 = vld [vmem:[#allocation6] sm:$0x1] }
  0x11   :  { %80 = vmatpush.msra.mxu0 %v69_v7 }
  0x13   :  { %81 = vmatpush.msra.mxu0 %v68_v8 }
  0x15   :  { %82 = vmatpush.msra.mxu0 %v67_v9 }
  0x17   :  { %83 = vmatpush.msra.mxu0 %v66_v10 }
  0x19   :  { %84 = vmatpush.msra.mxu0 %v65_v11 }
  0x1b   :  { %85 = vmatpush.msra.mxu0 %v64_v12 }
  0x1d   :  { %86 = vmatpush.msra.mxu0 %v63_v13 }
  0x1f   :  { %87 = vmatpush.msra.mxu0 %v62_v14 }
  0x21   :  { %88 = vmatpush.msra.mxu0 %v61_v15 }
  0x23   :  { %89 = vmatpush.msra.mxu0 %v60_v16 }
  0x25   :  { %90 = vmatpush.msra.mxu0 %v59_v17 }
  0x7c   :  { %v45_v20 = vpop.xlane.xlu0 %44 }
  0x7d   :  { %169 = vrsqrt.f32 %v45_v20  ;;  %vm52_vm1 = vweird.f32 %v45_v20 }
  0x7f   :  { %v112_v33 = vpop.permute.xlu1 %111 }
  0x80   :  { %vm113_vm3 = vcmp.eq.s32.totalorder %v96_v32, %v112_v33 }
  0x83   :  { %v170_v21 = vpop.eup %169 }
  0x84   :  { %v47_v22 = vmul.f32 %v170_v21, %v45_v20  ;;  %vm53_vm0 = vweird.f32 %v170_v21 }
  0x85   :  { %vm54_vm2 = vmor %vm52_vm1, %vm53_vm0 }
  0x86   :  { %v48_v23 = vmul.f32 %v170_v21, %v47_v22 }
  0x88   :  { %v49_v24 = vmul.f32 0.5, %v48_v23 }
  0x8a   :  { %v50_v25 = vsub.f32 1.5, %v49_v24 }
  0x8c   :  { %v51_v26 = vmul.f32 %v170_v21, %v50_v25 }
  0x8e   :  { %v55_v28 = vsel %vm54_vm2, %v170_v21, %v51_v26 }
  0x8f   :  { %v57_v29 = vmul.f32 %v56_v27, %v55_v28 }
  0x91   :  { %v58_v30 = vmul.f32 %v57_v29, %v41_v0 }
  0x93   :  { %91 = vmatmul.f32.vlgmr.msra.gmra.mxu0 %v58_v30 }
 0x110   :  { %v92_v34 = vpop.f32.mrf.mxu0 }
 0x111   :  { %v114_v35 = vsel %vm113_vm3, %v92_v34, 0.0  ;;  %v98_v36 = vsel %vm97_vm4, %v92_v34, -1e+30 }
 0x112   :  { %115 = vadd.xlane.f32.xlu2 %v114_v35  ;;  %99 = vmax.xlane.f32.xlu0 %v98_v36 }
 0x185   :  { %v100_v37 = vpop.xlane.xlu0 %99  ;;  %v116_v45 = vpop.xlane.xlu2 %115 }
 0x186   :  { %v101_v38 = vsub.f32 %v98_v36, %v100_v37 }
 0x188   :  { %v102_v39 = vmul.f32 1.442695, %v101_v38 }
 0x18a   :  { %171 = vpow2.f32 %v102_v39 }
 0x190   :  { %v172_v40 = vpop.eup %171 }
 0x191   :  { %104 = vadd.xlane.f32.xlu1 %v172_v40 }
 0x204   :  { %v105_v41 = vpop.xlane.xlu1 %104 }
 0x205   :  { %173 = vlog2.f32 %v105_v41 }
 0x20b   :  { %v174_v42 = vpop.eup %173 }
 0x20c   :  { %v107_v43 = vmul.f32 0.6931472, %v174_v42 }
 0x20e   :  { %v108_v44 = vadd.f32 %v107_v43, %v100_v37 }
 0x210   :  { %v123_v46 = vsub.f32 %v108_v44, %v116_v45 }
 0x212   :  { %v127_v47 = vsel %vm126_vm5, %v123_v46, 0.0 }
 0x213   :  { %128 = vadd.xlane.f32.xlu2 %v127_v47 }
 0x286   :  { %v129_v49 = vpop.xlane.xlu2 %128 }
 0x287   :  { %v130_v50 = vrot.slane %v129_v49, 4 }
 0x289   :  { %v131_v51 = vadd.f32 %v130_v50, %v129_v49 }
 0x28b   :  { %v132_v52 = vrot.slane %v131_v51, 2 }
 0x28d   :  { %v133_v53 = vadd.f32 %v132_v52, %v131_v51 }
 0x28f   :  { %v134_v54 = vrot.slane %v133_v53, 1 }
 0x291   :  { %v135_v55 = vadd.f32 %v134_v54, %v133_v53 }
 0x293   :  { %159 = vpush %v135_v55 }
 0x2c4   :  { %s160_s0 = spop %159 }
 0x2c5   :  { %v137_v57 = vstv %s160_s0 }
 0x2c6   :  { %v138_v58 = vmul.f32 0.125, %v137_v57 }
 0x2c8   :  { %v139_v59 = vadd.f32 %v138_v58, %v125_v56 }
 0x2ca   :  { %141 = vst.msk [vmem:[#allocation6] sm:$0x1] %vm39_vm6, %v139_v59 }
 0x2cb   :  { %152 = dma.vmem_to_hbm [thread:$0]  %s148_s26, 16, %s150_s29, [#allocation5]  }
 0x2cc   :  { %225 = dma.done.wait [#allocation5], 16  }
 0x2cd   :  { %226 = vsyncadd [#allocation5], 4294967280 }
 0x2ce   :  { %157 = vsyncpa [#allocation4], 1 }
 0x2cf   :  { %158 = vsyncpa [#allocation5], 1 }

</bundles_post_ra>
